<compile_context>
chip_gen: v7x
topology: tpu7x:2x2x1
jax: 0.10.0
libtpu: 0.0.40
codegen_flags: <defaults>
</compile_context>

<pallas_src>
import functools
import math

import jax
import jax.numpy as jnp
from jax.experimental import pallas as pl
from jax.experimental.pallas import tpu as pltpu


def mha_kernel(*refs, n_head, d_k, d_v, use_fc, eps):
    if use_fc:
        (q_ref, k_ref, v_ref, wq_ref, wk_ref, wv_ref, wfc_ref,
         gamma_ref, beta_ref, out_ref, attn_ref) = refs
    else:
        (q_ref, k_ref, v_ref, wq_ref, wk_ref, wv_ref,
         gamma_ref, beta_ref, out_ref, attn_ref) = refs
        wfc_ref = None

    q_f32 = q_ref[...]                        # (Tq, D) f32 — residual kept in full precision
    q_bf = q_f32.astype(jnp.bfloat16)         # cast once (hoisted out of the head loop)
    k_bf = k_ref[...]                         # (Lk, D) bf16
    v_bf = v_ref[...]                         # (Lk, D) bf16

    # Fused per-head projections: one wide, lane-dense MXU matmul per operand.
    # 1/temperature is already folded into wq host-side.
    qh_all = jnp.dot(q_bf, wq_ref[...], preferred_element_type=jnp.float32)  # (Tq, H*d_k)
    kh_all = jnp.dot(k_bf, wk_ref[...], preferred_element_type=jnp.float32)  # (Lk, H*d_k)
    vh_all = jnp.dot(v_bf, wv_ref[...], preferred_element_type=jnp.float32)  # (Lk, H*d_v)
    qh_all = qh_all.astype(jnp.bfloat16)
    kh_all = kh_all.astype(jnp.bfloat16)
    vh_all = vh_all.astype(jnp.bfloat16)

    acc = q_f32  # start from the residual; per-head fc contributions accumulate below.

    # Static unroll over heads (n_head is a compile-time constant): no grid-step overhead.
    for h in range(n_head):
        qh = qh_all[:, h * d_k:(h + 1) * d_k]          # (Tq, d_k)  static lane slices
        kh = kh_all[:, h * d_k:(h + 1) * d_k]          # (Lk, d_k)
        vh = vh_all[:, h * d_v:(h + 1) * d_v]          # (Lk, d_v)

        # Scores: contract the last dims directly (no materialized transpose of kh).
        scores = jax.lax.dot_general(
            qh, kh, dimension_numbers=(((1,), (1,)), ((), ())),
            preferred_element_type=jnp.float32)        # (Tq, Lk)

        # TODO(synk): attn_mask path (masked_fill with -1e6) not wired; mask is None here.
        m = jnp.max(scores, axis=-1, keepdims=True)
        e = jnp.exp(scores - m)
        denom = jnp.sum(e, axis=-1, keepdims=True)
        attn = e / denom                               # exact softmax: rows sum to 1
        # attn dropout is identity in eval mode.
        attn_ref[h, ...] = attn.astype(attn_ref.dtype)  # bf16 writeback (half the HBM bytes)

        head_out = jnp.dot(attn.astype(jnp.bfloat16), vh,
                           preferred_element_type=jnp.float32)   # (Tq, d_v)

        if use_fc:
            # concat(heads) @ fc  ==  sum_h head_out_h @ fc[h*d_v:(h+1)*d_v, :]
            acc = acc + jnp.dot(head_out.astype(jnp.bfloat16),
                                wfc_ref[h * d_v:(h + 1) * d_v, :],
                                preferred_element_type=jnp.float32)       # (Tq, D)
        else:
            acc = acc + head_out                       # requires d_v == d_model

    # Output dropout is identity in eval mode; LayerNorm with two-pass variance.
    mean = jnp.mean(acc, axis=-1, keepdims=True)
    c = acc - mean
    var = jnp.mean(c * c, axis=-1, keepdims=True)
    y = c * jax.lax.rsqrt(var + eps)
    out_ref[...] = (y * gamma_ref[...] + beta_ref[...]).astype(out_ref.dtype)


def prepare_params(params, *, n_head, d_k, d_v):
    """Host-side weight prep: stack heads wide, fold 1/temperature into wq, cast to bf16."""
    D = params["w_qs"].shape[1]
    inv_temp = 1.0 / math.sqrt(d_k)
    # nn.Linear weight (n_head*d_h, D); x @ W^T kernel form = (D, n_head*d_h), head-major cols.
    wq = (params["w_qs"].T * inv_temp).astype(jnp.bfloat16)   # (D, H*d_k), temperature folded
    wk = params["w_ks"].T.astype(jnp.bfloat16)                # (D, H*d_k)
    wv = params["w_vs"].T.astype(jnp.bfloat16)                # (D, H*d_v)
    wfc = params["fc"].T.astype(jnp.bfloat16) if n_head > 1 else None    # (H*d_v, D)
    gamma = params["ln_gamma"].reshape(1, D).astype(jnp.float32)
    beta = params["ln_beta"].reshape(1, D).astype(jnp.float32)
    return wq, wk, wv, wfc, gamma, beta


def _vmem_limit_bytes():
    """Per-generation VMEM budget (~70% of physical; 64 MiB/TC on v7x, 128 MiB v5e/v6e)."""
    try:
        cap = int(pltpu.get_tpu_info().vmem_capacity_bytes)
    except Exception:
        cap = 128 * 1024 * 1024
    return min(int(cap * 0.7), 96 * 1024 * 1024)


def multi_head_attention(q, k, v, params, *, n_head, d_k, d_v,
                         tile_q=None, attn_dtype=jnp.bfloat16, eps=1e-5):
    B, Lq, D = q.shape
    _, Lk, _ = k.shape
    use_fc = n_head > 1
    if not use_fc:
        assert d_v == D, "n_head == 1 path has no fc layer and requires d_v == d_model"

    if tile_q is None:
        tile_q = Lq if Lq <= 256 else 256
    assert Lq % tile_q == 0, "Lq must be divisible by the q-tile size"
    num_q_tiles = Lq // tile_q

    wq, wk, wv, wfc, gamma, beta = prepare_params(params, n_head=n_head, d_k=d_k, d_v=d_v)

    q = q.astype(jnp.float32)          # kept f32: exact residual; cast to bf16 in-kernel
    k_bf = k.astype(jnp.bfloat16)      # halve HBM->VMEM bytes for k/v
    v_bf = v.astype(jnp.bfloat16)

    kernel = functools.partial(mha_kernel, n_head=n_head, d_k=d_k, d_v=d_v,
                               use_fc=use_fc, eps=eps)

    in_specs = [
        pl.BlockSpec((None, tile_q, D), lambda b, i: (b, i, 0)),      # q  (f32)
        pl.BlockSpec((None, Lk, D), lambda b, i: (b, 0, 0)),          # k  (bf16)
        pl.BlockSpec((None, Lk, D), lambda b, i: (b, 0, 0)),          # v  (bf16)
        pl.BlockSpec((D, n_head * d_k), lambda b, i: (0, 0)),         # wq (scaled, bf16)
        pl.BlockSpec((D, n_head * d_k), lambda b, i: (0, 0)),         # wk
        pl.BlockSpec((D, n_head * d_v), lambda b, i: (0, 0)),         # wv
    ]
    args = [q, k_bf, v_bf, wq, wk, wv]
    if use_fc:
        in_specs.append(pl.BlockSpec((n_head * d_v, D), lambda b, i: (0, 0)))  # fc
        args.append(wfc)
    in_specs += [
        pl.BlockSpec((1, D), lambda b, i: (0, 0)),                    # ln gamma
        pl.BlockSpec((1, D), lambda b, i: (0, 0)),                    # ln beta
    ]
    args += [gamma, beta]

    out, attn = pl.pallas_call(
        kernel,
        out_shape=(jax.ShapeDtypeStruct((B, Lq, D), jnp.float32),
                   jax.ShapeDtypeStruct((n_head, B, Lq, Lk), attn_dtype)),
        grid=(B, num_q_tiles),
        in_specs=in_specs,
        out_specs=(
            pl.BlockSpec((None, tile_q, D), lambda b, i: (b, i, 0)),
            pl.BlockSpec((n_head, None, tile_q, Lk), lambda b, i: (0, b, i, 0)),
        ),
        compiler_params=pltpu.CompilerParams(
            dimension_semantics=("parallel", "parallel"),   # no cross-step reduction axis
            vmem_limit_bytes=_vmem_limit_bytes()),
    )(*args)

    # Head-major flattening matches PyTorch's view(-1, len_q, len_k).
    return out, attn.reshape(n_head * B, Lq, Lk)


def reference_mha(q, k, v, params, *, n_head, d_k, d_v, eps=1e-5, attn_dtype=jnp.bfloat16):
    """Pure-JAX mirror of the kernel math (eval mode, mask=None, bf16 MXU inputs)."""
    B, Lq, D = q.shape
    _, Lk, _ = k.shape
    wq, wk, wv, wfc, gamma, beta = prepare_params(params, n_head=n_head, d_k=d_k, d_v=d_v)

    q_bf = q.astype(jnp.bfloat16)
    k_bf = k.astype(jnp.bfloat16)
    v_bf = v.astype(jnp.bfloat16)

    qh = jnp.einsum("bld,dk->blk", q_bf, wq,
                    preferred_element_type=jnp.float32).astype(jnp.bfloat16)
    kh = jnp.einsum("bld,dk->blk", k_bf, wk,
                    preferred_element_type=jnp.float32).astype(jnp.bfloat16)
    vh = jnp.einsum("bld,dv->blv", v_bf, wv,
                    preferred_element_type=jnp.float32).astype(jnp.bfloat16)

    qh = qh.reshape(B, Lq, n_head, d_k)
    kh = kh.reshape(B, Lk, n_head, d_k)
    vh = vh.reshape(B, Lk, n_head, d_v)

    scores = jnp.einsum("bqhc,bkhc->bhqk", qh, kh, preferred_element_type=jnp.float32)
    m = jnp.max(scores, axis=-1, keepdims=True)
    e = jnp.exp(scores - m)
    attn = e / jnp.sum(e, axis=-1, keepdims=True)
    head_out = jnp.einsum("bhqk,bkhv->bhqv", attn.astype(jnp.bfloat16), vh,
                          preferred_element_type=jnp.float32)

    if n_head > 1:
        wfc_h = wfc.reshape(n_head, d_v, D)
        o = jnp.einsum("bhqv,hvd->bqd", head_out.astype(jnp.bfloat16), wfc_h,
                       preferred_element_type=jnp.float32)
    else:
        o = head_out[:, 0]

    x = q.astype(jnp.float32) + o
    mean = x.mean(-1, keepdims=True)
    c = x - mean
    var = (c * c).mean(-1, keepdims=True)
    y = c * jax.lax.rsqrt(var + eps) * gamma + beta

    attn_hm = jnp.transpose(attn, (1, 0, 2, 3)).reshape(n_head * B, Lq, Lk).astype(attn_dtype)
    return y, attn_hm


def init_params(key, *, d_model, n_head, d_k, d_v):
    k1, k2, k3, k4 = jax.random.split(key, 4)
    std_qk = math.sqrt(2.0 / (d_model + d_k))
    std_v = math.sqrt(2.0 / (d_model + d_v))
    std_fc = math.sqrt(2.0 / (n_head * d_v + d_model))  # xavier_normal
    return {
        "w_qs": std_qk * jax.random.normal(k1, (n_head * d_k, d_model), jnp.float32),
        "w_ks": std_qk * jax.random.normal(k2, (n_head * d_k, d_model), jnp.float32),
        "w_vs": std_v * jax.random.normal(k3, (n_head * d_v, d_model), jnp.float32),
        "fc": std_fc * jax.random.normal(k4, (d_model, n_head * d_v), jnp.float32),
        "ln_gamma": jnp.ones((d_model,), jnp.float32),
        "ln_beta": jnp.zeros((d_model,), jnp.float32),
    }


if __name__ == "__main__":
    B, L, d_model = 2, 8, 32
    n_head, d_k, d_v = 2, 16, 16

    key = jax.random.PRNGKey(0)
    kp, kq, kk, kv = jax.random.split(key, 4)
    params = init_params(kp, d_model=d_model, n_head=n_head, d_k=d_k, d_v=d_v)

    q = jax.random.normal(kq, (B, L, d_model), jnp.float32)
    k = jax.random.normal(kk, (B, L, d_model), jnp.float32)
    v = jax.random.normal(kv, (B, L, d_model), jnp.float32)

    out, attn = multi_head_attention(q, k, v, params, n_head=n_head, d_k=d_k, d_v=d_v)
    jax.block_until_ready((out, attn))

    ref_out, ref_attn = reference_mha(q, k, v, params, n_head=n_head, d_k=d_k, d_v=d_v)
    assert out.shape == (B, L, d_model)
    assert attn.shape == (n_head * B, L, L)

    out_err = float(jnp.max(jnp.abs(out - ref_out)))
    attn_err = float(jnp.max(jnp.abs(attn.astype(jnp.float32) - ref_attn.astype(jnp.float32))))
    assert jnp.allclose(out, ref_out, rtol=5e-3, atol=5e-3), out_err
    assert jnp.allclose(attn.astype(jnp.float32), ref_attn.astype(jnp.float32),
                        rtol=1e-2, atol=1e-2), attn_err

    print("KERNEL_OK")
</pallas_src>

<mosaic_0001>
module attributes {stable_mosaic.version = 11 : i64} {
  func.func @mha_kernel(%arg0: i32, %arg1: i32, %arg2: memref<1x8x32xf32, #tpu.memory_space<vmem>>, %arg3: memref<1x8x32xbf16, #tpu.memory_space<vmem>>, %arg4: memref<1x8x32xbf16, #tpu.memory_space<vmem>>, %arg5: memref<32x32xbf16, #tpu.memory_space<vmem>>, %arg6: memref<32x32xbf16, #tpu.memory_space<vmem>>, %arg7: memref<32x32xbf16, #tpu.memory_space<vmem>>, %arg8: memref<32x32xbf16, #tpu.memory_space<vmem>>, %arg9: memref<1x32xf32, #tpu.memory_space<vmem>>, %arg10: memref<1x32xf32, #tpu.memory_space<vmem>>, %arg11: memref<1x8x32xf32, #tpu.memory_space<vmem>>, %arg12: memref<2x1x8x8xbf16, #tpu.memory_space<vmem>>) attributes {dimension_semantics = [#tpu.dimension_semantics<parallel>, #tpu.dimension_semantics<parallel>], iteration_bounds = array<i64: 2, 1>, scalar_prefetch = 0 : i64, scratch_operands = 0 : i64, tpu.core_type = #tpu.core_type<tc>, window_params = [{transform_indices = @transform_0, window_bounds = array<i64: 1, 8, 32>}, {transform_indices = @transform_1, window_bounds = array<i64: 1, 8, 32>}, {transform_indices = @transform_2, window_bounds = array<i64: 1, 8, 32>}, {pipeline_mode = #tpu.pipeline_mode<synchronous>, transform_indices = @transform_3, window_bounds = array<i64: 32, 32>}, {pipeline_mode = #tpu.pipeline_mode<synchronous>, transform_indices = @transform_4, window_bounds = array<i64: 32, 32>}, {pipeline_mode = #tpu.pipeline_mode<synchronous>, transform_indices = @transform_5, window_bounds = array<i64: 32, 32>}, {pipeline_mode = #tpu.pipeline_mode<synchronous>, transform_indices = @transform_6, window_bounds = array<i64: 32, 32>}, {pipeline_mode = #tpu.pipeline_mode<synchronous>, transform_indices = @transform_7, window_bounds = array<i64: 1, 32>}, {pipeline_mode = #tpu.pipeline_mode<synchronous>, transform_indices = @transform_8, window_bounds = array<i64: 1, 32>}, {transform_indices = @transform_9, window_bounds = array<i64: 1, 8, 32>}, {transform_indices = @transform_10, window_bounds = array<i64: 2, 1, 8, 8>}]} {
    %c0 = arith.constant 0 : index
    %c0_0 = arith.constant 0 : index
    %c0_1 = arith.constant 0 : index
    %0 = vector.load %arg2[%c0, %c0_0, %c0_1] : memref<1x8x32xf32, #tpu.memory_space<vmem>>, vector<1x8x32xf32>
    %1 = vector.shape_cast %0 : vector<1x8x32xf32> to vector<8x32xf32>
    %2 = arith.truncf %1 : vector<8x32xf32> to vector<8x32xbf16>
    %c0_2 = arith.constant 0 : index
    %c0_3 = arith.constant 0 : index
    %c0_4 = arith.constant 0 : index
    %3 = vector.load %arg3[%c0_2, %c0_3, %c0_4] : memref<1x8x32xbf16, #tpu.memory_space<vmem>>, vector<1x8x32xbf16>
    %4 = vector.shape_cast %3 : vector<1x8x32xbf16> to vector<8x32xbf16>
    %c0_5 = arith.constant 0 : index
    %c0_6 = arith.constant 0 : index
    %c0_7 = arith.constant 0 : index
    %5 = vector.load %arg4[%c0_5, %c0_6, %c0_7] : memref<1x8x32xbf16, #tpu.memory_space<vmem>>, vector<1x8x32xbf16>
    %6 = vector.shape_cast %5 : vector<1x8x32xbf16> to vector<8x32xbf16>
    %c0_8 = arith.constant 0 : index
    %c0_9 = arith.constant 0 : index
    %7 = vector.load %arg5[%c0_8, %c0_9] : memref<32x32xbf16, #tpu.memory_space<vmem>>, vector<32x32xbf16>
    %cst = arith.constant dense<0.000000e+00> : vector<8x32xf32>
    %8 = tpu.matmul %2, %7, %cst {dimension_numbers = #tpu.dot_dimension_numbers<[1], [0], [0], [1], [0, 0, 1, 1], [], []>} : vector<8x32xbf16>, vector<32x32xbf16>, vector<8x32xf32> -> vector<8x32xf32>
    %c0_10 = arith.constant 0 : index
    %c0_11 = arith.constant 0 : index
    %9 = vector.load %arg6[%c0_10, %c0_11] : memref<32x32xbf16, #tpu.memory_space<vmem>>, vector<32x32xbf16>
    %cst_12 = arith.constant dense<0.000000e+00> : vector<8x32xf32>
    %10 = tpu.matmul %4, %9, %cst_12 {dimension_numbers = #tpu.dot_dimension_numbers<[1], [0], [0], [1], [0, 0, 1, 1], [], []>} : vector<8x32xbf16>, vector<32x32xbf16>, vector<8x32xf32> -> vector<8x32xf32>
    %c0_13 = arith.constant 0 : index
    %c0_14 = arith.constant 0 : index
    %11 = vector.load %arg7[%c0_13, %c0_14] : memref<32x32xbf16, #tpu.memory_space<vmem>>, vector<32x32xbf16>
    %cst_15 = arith.constant dense<0.000000e+00> : vector<8x32xf32>
    %12 = tpu.matmul %6, %11, %cst_15 {dimension_numbers = #tpu.dot_dimension_numbers<[1], [0], [0], [1], [0, 0, 1, 1], [], []>} : vector<8x32xbf16>, vector<32x32xbf16>, vector<8x32xf32> -> vector<8x32xf32>
    %13 = arith.truncf %8 : vector<8x32xf32> to vector<8x32xbf16>
    %14 = arith.truncf %10 : vector<8x32xf32> to vector<8x32xbf16>
    %15 = arith.truncf %12 : vector<8x32xf32> to vector<8x32xbf16>
    %16 = vector.extract_strided_slice %13 {offsets = [0, 0], sizes = [8, 16], strides = [1, 1]} : vector<8x32xbf16> to vector<8x16xbf16>
    %17 = vector.extract_strided_slice %14 {offsets = [0, 0], sizes = [8, 16], strides = [1, 1]} : vector<8x32xbf16> to vector<8x16xbf16>
    %18 = vector.extract_strided_slice %15 {offsets = [0, 0], sizes = [8, 16], strides = [1, 1]} : vector<8x32xbf16> to vector<8x16xbf16>
    %cst_16 = arith.constant dense<0.000000e+00> : vector<8x8xf32>
    %19 = tpu.matmul %16, %17, %cst_16 {dimension_numbers = #tpu.dot_dimension_numbers<[1], [1], [0], [0], [0, 0, 1, 0], [], []>} : vector<8x16xbf16>, vector<8x16xbf16>, vector<8x8xf32> -> vector<8x8xf32>
    %cst_17 = arith.constant dense<0xFF800000> : vector<8xf32>
    %20 = vector.multi_reduction <maximumf>, %19, %cst_17 [1] : vector<8x8xf32> to vector<8xf32>
    %21 = vector.shape_cast %20 : vector<8xf32> to vector<8x1xf32>
    %22 = vector.broadcast %21 : vector<8x1xf32> to vector<8x8xf32>
    %23 = arith.subf %19, %22 : vector<8x8xf32>
    %24 = math.exp %23 : vector<8x8xf32>
    %cst_18 = arith.constant dense<0.000000e+00> : vector<8xf32>
    %25 = vector.multi_reduction <add>, %24, %cst_18 [1] : vector<8x8xf32> to vector<8xf32>
    %26 = vector.shape_cast %25 : vector<8xf32> to vector<8x1xf32>
    %27 = vector.broadcast %26 : vector<8x1xf32> to vector<8x8xf32>
    %28 = arith.divf %24, %27 : vector<8x8xf32>
    %29 = arith.truncf %28 : vector<8x8xf32> to vector<8x8xbf16>
    %c0_19 = arith.constant 0 : index
    %c0_20 = arith.constant 0 : index
    %c0_21 = arith.constant 0 : index
    %c0_22 = arith.constant 0 : index
    %30 = vector.load %arg12[%c0_19, %c0_20, %c0_21, %c0_22] : memref<2x1x8x8xbf16, #tpu.memory_space<vmem>>, vector<1x1x8x8xbf16>
    %31 = vector.shape_cast %30 : vector<1x1x8x8xbf16> to vector<8x8xbf16>
    %32 = vector.shape_cast %29 : vector<8x8xbf16> to vector<1x1x8x8xbf16>
    tpu.vector_store %arg12[%c0_19, %c0_20, %c0_21, %c0_22], %32 {strides = array<i32>} : memref<2x1x8x8xbf16, #tpu.memory_space<vmem>>, vector<1x1x8x8xbf16>,
    %33 = arith.truncf %28 : vector<8x8xf32> to vector<8x8xbf16>
    %cst_23 = arith.constant dense<0.000000e+00> : vector<8x16xf32>
    %34 = tpu.matmul %33, %18, %cst_23 {dimension_numbers = #tpu.dot_dimension_numbers<[1], [0], [0], [1], [0, 0, 1, 1], [], []>} : vector<8x8xbf16>, vector<8x16xbf16>, vector<8x16xf32> -> vector<8x16xf32>
    %35 = arith.truncf %34 : vector<8x16xf32> to vector<8x16xbf16>
    %c0_24 = arith.constant 0 : index
    %c0_25 = arith.constant 0 : index
    %36 = vector.load %arg8[%c0_24, %c0_25] : memref<32x32xbf16, #tpu.memory_space<vmem>>, vector<16x32xbf16>
    %cst_26 = arith.constant dense<0.000000e+00> : vector<8x32xf32>
    %37 = tpu.matmul %35, %36, %cst_26 {dimension_numbers = #tpu.dot_dimension_numbers<[1], [0], [0], [1], [0, 0, 1, 1], [], []>} : vector<8x16xbf16>, vector<16x32xbf16>, vector<8x32xf32> -> vector<8x32xf32>
    %38 = arith.addf %1, %37 : vector<8x32xf32>
    %39 = vector.extract_strided_slice %13 {offsets = [0, 16], sizes = [8, 16], strides = [1, 1]} : vector<8x32xbf16> to vector<8x16xbf16>
    %40 = vector.extract_strided_slice %14 {offsets = [0, 16], sizes = [8, 16], strides = [1, 1]} : vector<8x32xbf16> to vector<8x16xbf16>
    %41 = vector.extract_strided_slice %15 {offsets = [0, 16], sizes = [8, 16], strides = [1, 1]} : vector<8x32xbf16> to vector<8x16xbf16>
    %cst_27 = arith.constant dense<0.000000e+00> : vector<8x8xf32>
    %42 = tpu.matmul %39, %40, %cst_27 {dimension_numbers = #tpu.dot_dimension_numbers<[1], [1], [0], [0], [0, 0, 1, 0], [], []>} : vector<8x16xbf16>, vector<8x16xbf16>, vector<8x8xf32> -> vector<8x8xf32>
    %cst_28 = arith.constant dense<0xFF800000> : vector<8xf32>
    %43 = vector.multi_reduction <maximumf>, %42, %cst_28 [1] : vector<8x8xf32> to vector<8xf32>
    %44 = vector.shape_cast %43 : vector<8xf32> to vector<8x1xf32>
    %45 = vector.broadcast %44 : vector<8x1xf32> to vector<8x8xf32>
    %46 = arith.subf %42, %45 : vector<8x8xf32>
    %47 = math.exp %46 : vector<8x8xf32>
    %cst_29 = arith.constant dense<0.000000e+00> : vector<8xf32>
    %48 = vector.multi_reduction <add>, %47, %cst_29 [1] : vector<8x8xf32> to vector<8xf32>
    %49 = vector.shape_cast %48 : vector<8xf32> to vector<8x1xf32>
    %50 = vector.broadcast %49 : vector<8x1xf32> to vector<8x8xf32>
    %51 = arith.divf %47, %50 : vector<8x8xf32>
    %52 = arith.truncf %51 : vector<8x8xf32> to vector<8x8xbf16>
    %c1 = arith.constant 1 : index
    %c0_30 = arith.constant 0 : index
    %c0_31 = arith.constant 0 : index
    %c0_32 = arith.constant 0 : index
    %53 = vector.load %arg12[%c1, %c0_30, %c0_31, %c0_32] : memref<2x1x8x8xbf16, #tpu.memory_space<vmem>>, vector<1x1x8x8xbf16>
    %54 = vector.shape_cast %53 : vector<1x1x8x8xbf16> to vector<8x8xbf16>
    %55 = vector.shape_cast %52 : vector<8x8xbf16> to vector<1x1x8x8xbf16>
    tpu.vector_store %arg12[%c1, %c0_30, %c0_31, %c0_32], %55 {strides = array<i32>} : memref<2x1x8x8xbf16, #tpu.memory_space<vmem>>, vector<1x1x8x8xbf16>,
    %56 = arith.truncf %51 : vector<8x8xf32> to vector<8x8xbf16>
    %cst_33 = arith.constant dense<0.000000e+00> : vector<8x16xf32>
    %57 = tpu.matmul %56, %41, %cst_33 {dimension_numbers = #tpu.dot_dimension_numbers<[1], [0], [0], [1], [0, 0, 1, 1], [], []>} : vector<8x8xbf16>, vector<8x16xbf16>, vector<8x16xf32> -> vector<8x16xf32>
    %58 = arith.truncf %57 : vector<8x16xf32> to vector<8x16xbf16>
    %c16 = arith.constant 16 : index
    %c0_34 = arith.constant 0 : index
    %59 = vector.load %arg8[%c16, %c0_34] : memref<32x32xbf16, #tpu.memory_space<vmem>>, vector<16x32xbf16>
    %cst_35 = arith.constant dense<0.000000e+00> : vector<8x32xf32>
    %60 = tpu.matmul %58, %59, %cst_35 {dimension_numbers = #tpu.dot_dimension_numbers<[1], [0], [0], [1], [0, 0, 1, 1], [], []>} : vector<8x16xbf16>, vector<16x32xbf16>, vector<8x32xf32> -> vector<8x32xf32>
    %61 = arith.addf %38, %60 : vector<8x32xf32>
    %cst_36 = arith.constant dense<0.000000e+00> : vector<8xf32>
    %62 = vector.multi_reduction <add>, %61, %cst_36 [1] : vector<8x32xf32> to vector<8xf32>
    %63 = vector.shape_cast %62 : vector<8xf32> to vector<8x1xf32>
    %cst_37 = arith.constant 3.200000e+01 : f32
    %64 = vector.broadcast %cst_37 : f32 to vector<8x1xf32>
    %65 = arith.divf %63, %64 : vector<8x1xf32>
    %66 = vector.broadcast %65 : vector<8x1xf32> to vector<8x32xf32>
    %67 = arith.subf %61, %66 : vector<8x32xf32>
    %68 = arith.mulf %67, %67 : vector<8x32xf32>
    %cst_38 = arith.constant dense<0.000000e+00> : vector<8xf32>
    %69 = vector.multi_reduction <add>, %68, %cst_38 [1] : vector<8x32xf32> to vector<8xf32>
    %70 = vector.shape_cast %69 : vector<8xf32> to vector<8x1xf32>
    %cst_39 = arith.constant 3.200000e+01 : f32
    %71 = vector.broadcast %cst_39 : f32 to vector<8x1xf32>
    %72 = arith.divf %70, %71 : vector<8x1xf32>
    %cst_40 = arith.constant 9.99999974E-6 : f32
    %73 = vector.broadcast %cst_40 : f32 to vector<8x1xf32>
    %74 = arith.addf %72, %73 : vector<8x1xf32>
    %75 = math.rsqrt %74 : vector<8x1xf32>
    %76 = vector.broadcast %75 : vector<8x1xf32> to vector<8x32xf32>
    %77 = arith.mulf %67, %76 : vector<8x32xf32>
    %c0_41 = arith.constant 0 : index
    %c0_42 = arith.constant 0 : index
    %78 = vector.load %arg9[%c0_41, %c0_42] : memref<1x32xf32, #tpu.memory_space<vmem>>, vector<1x32xf32>
    %79 = vector.broadcast %78 : vector<1x32xf32> to vector<8x32xf32>
    %80 = arith.mulf %77, %79 : vector<8x32xf32>
    %c0_43 = arith.constant 0 : index
    %c0_44 = arith.constant 0 : index
    %81 = vector.load %arg10[%c0_43, %c0_44] : memref<1x32xf32, #tpu.memory_space<vmem>>, vector<1x32xf32>
    %82 = vector.broadcast %81 : vector<1x32xf32> to vector<8x32xf32>
    %83 = arith.addf %80, %82 : vector<8x32xf32>
    %c0_45 = arith.constant 0 : index
    %c0_46 = arith.constant 0 : index
    %c0_47 = arith.constant 0 : index
    %84 = vector.load %arg11[%c0_45, %c0_46, %c0_47] : memref<1x8x32xf32, #tpu.memory_space<vmem>>, vector<1x8x32xf32>
    %85 = vector.shape_cast %84 : vector<1x8x32xf32> to vector<8x32xf32>
    %86 = vector.shape_cast %83 : vector<8x32xf32> to vector<1x8x32xf32>
    tpu.vector_store %arg11[%c0_45, %c0_46, %c0_47], %86 {strides = array<i32>} : memref<1x8x32xf32, #tpu.memory_space<vmem>>, vector<1x8x32xf32>,
    return
  }
  func.func @transform_0(%arg0: i32, %arg1: i32) -> (i32, i32, i32) {
    %c0_i32 = arith.constant 0 : i32
    %c0_i32_0 = arith.constant 0 : i32
    return %arg0, %arg1, %c0_i32 : i32, i32, i32
  }
  func.func @transform_1(%arg0: i32, %arg1: i32) -> (i32, i32, i32) {
    %c0_i32 = arith.constant 0 : i32
    %c0_i32_0 = arith.constant 0 : i32
    %c0_i32_1 = arith.constant 0 : i32
    return %arg0, %c0_i32, %c0_i32_0 : i32, i32, i32
  }
  func.func @transform_2(%arg0: i32, %arg1: i32) -> (i32, i32, i32) {
    %c0_i32 = arith.constant 0 : i32
    %c0_i32_0 = arith.constant 0 : i32
    %c0_i32_1 = arith.constant 0 : i32
    return %arg0, %c0_i32, %c0_i32_0 : i32, i32, i32
  }
  func.func @transform_3(%arg0: i32, %arg1: i32) -> (i32, i32) {
    %c0_i32 = arith.constant 0 : i32
    %c0_i32_0 = arith.constant 0 : i32
    %c0_i32_1 = arith.constant 0 : i32
    return %c0_i32, %c0_i32_0 : i32, i32
  }
  func.func @transform_4(%arg0: i32, %arg1: i32) -> (i32, i32) {
    %c0_i32 = arith.constant 0 : i32
    %c0_i32_0 = arith.constant 0 : i32
    %c0_i32_1 = arith.constant 0 : i32
    return %c0_i32, %c0_i32_0 : i32, i32
  }
  func.func @transform_5(%arg0: i32, %arg1: i32) -> (i32, i32) {
    %c0_i32 = arith.constant 0 : i32
    %c0_i32_0 = arith.constant 0 : i32
    %c0_i32_1 = arith.constant 0 : i32
    return %c0_i32, %c0_i32_0 : i32, i32
  }
  func.func @transform_6(%arg0: i32, %arg1: i32) -> (i32, i32) {
    %c0_i32 = arith.constant 0 : i32
    %c0_i32_0 = arith.constant 0 : i32
    %c0_i32_1 = arith.constant 0 : i32
    return %c0_i32, %c0_i32_0 : i32, i32
  }
  func.func @transform_7(%arg0: i32, %arg1: i32) -> (i32, i32) {
    %c0_i32 = arith.constant 0 : i32
    %c0_i32_0 = arith.constant 0 : i32
    %c0_i32_1 = arith.constant 0 : i32
    return %c0_i32, %c0_i32_0 : i32, i32
  }
  func.func @transform_8(%arg0: i32, %arg1: i32) -> (i32, i32) {
    %c0_i32 = arith.constant 0 : i32
    %c0_i32_0 = arith.constant 0 : i32
    %c0_i32_1 = arith.constant 0 : i32
    return %c0_i32, %c0_i32_0 : i32, i32
  }
  func.func @transform_9(%arg0: i32, %arg1: i32) -> (i32, i32, i32) {
    %c0_i32 = arith.constant 0 : i32
    %c0_i32_0 = arith.constant 0 : i32
    return %arg0, %arg1, %c0_i32 : i32, i32, i32
  }
  func.func @transform_10(%arg0: i32, %arg1: i32) -> (i32, i32, i32, i32) {
    %c0_i32 = arith.constant 0 : i32
    %c0_i32_0 = arith.constant 0 : i32
    %c0_i32_1 = arith.constant 0 : i32
    return %c0_i32, %arg0, %arg1, %c0_i32_0 : i32, i32, i32, i32
  }
}

</mosaic_0001>

<bundles_post_ra>
// kernel: tpu_custom_call.1
= control target key start
LH: loop header
LB: loop body
LE: loop exit
PB: predicated region body
PF: predicated region fallthrough
CT: control target
= control target key end

     0   :  { %s2645_s0 = inlined_call_operand.hbm [shape: f32[2,8,32], index: 0, kind: input, shape index: {}]   ;;  %s2646_s1 = inlined_call_operand.hbm [shape: bf16[2,8,32], index: 1, kind: input, shape index: {}]   ;;  %s2647_s2 = inlined_call_operand.hbm [shape: bf16[2,8,32], index: 2, kind: input, shape index: {}]   ;;  %s2648_s3 = inlined_call_operand.hbm [shape: bf16[32,32], index: 3, kind: input, shape index: {}]   ;;  %s2649_s4 = inlined_call_operand.hbm [shape: bf16[32,32], index: 4, kind: input, shape index: {}]   ;;  %s2650_s5 = inlined_call_operand.hbm [shape: bf16[32,32], index: 5, kind: input, shape index: {}]   ;;  %s2651_s6 = inlined_call_operand.hbm [shape: bf16[32,32], index: 6, kind: input, shape index: {}]   ;;  %s2652_s7 = inlined_call_operand.hbm [shape: f32[1,32], index: 7, kind: input, shape index: {}]   ;;  %s2653_s8 = inlined_call_operand.hbm [shape: f32[1,32], index: 8, kind: input, shape index: {}]   ;;  %s2654_s9 = inlined_call_operand.hbm [shape: f32[2,8,32], index: 9, kind: output, shape index: {0}]   ;;  %s2655_s10 = inlined_call_operand.hbm [shape: bf16[2,2,8,8], index: 10, kind: output, shape index: {1}]  }
   0x1   :  { %2684 = sst [smem:[#allocation35_spill]] %s2646_s1 }
   0x2   :  { %2685 = sst [smem:[#allocation36_spill]] %s2648_s3 }
   0x3   :  { %2686 = sst [smem:[#allocation37_spill]] %s2650_s5 }
   0x4   :  { %2687 = sst [smem:[#allocation38_spill]] %s2652_s7 }
   0x5   :  { %2688 = sst [smem:[#allocation39_spill]] %s2654_s9 }
   0x6   :  { %2689 = sst [smem:[#allocation40_spill]] %s2655_s10 }
   0x7   :  { %16 = vsyncpa [#allocation3], 0 }
   0x8   :  { %18 = vsyncpa [#allocation3 + $0x1], 0 }
   0x9   :  { %19 = vsyncpa [#allocation6], 0 }
   0xa   :  { %21 = vsyncpa [#allocation6 + $0x1], 0 }
   0xb   :  { %22 = vsyncpa [#allocation9], 0 }
   0xc   :  { %23 = vsyncpa [#allocation12], 0 }
   0xd   :  { %24 = vsyncpa [#allocation15], 0 }
   0xe   :  { %25 = vsyncpa [#allocation4], 0 }
   0xf   :  { %27 = vsyncpa [#allocation4 + $0x1], 0 }
  0x10   :  { %28 = vsyncpa [#allocation19], 0 }
  0x11   :  { %30 = vsyncpa [#allocation19 + $0x1], 0  ;;  %s2123_s13 = smov 0   ;;  %s2125_s14 = smov 0  }
  0x12   :  { %s2127_s15 = smov 0   ;;  %s2129_s16 = smov 0  }
  0x13   :  { %s2131_s17 = smov 0   ;;  %s2133_s18 = smov 0  }
  0x14 LB: > { %2690 = sst [smem:[#allocation27_spill]] %s2027_s13  ;;  %s2154_s19 = sadd.s32 4294967295, %s2047_s18   ;;  %s2047_s18 = sphi %s2133_s18, %s36_s18   ;;  %s2043_s17 = sphi %s2131_s17, %s2744_s17   ;;  %s2039_s16 = sphi %s2129_s16, %s2743_s16   ;;  %s2035_s15 = sphi %s2127_s15, %s2739_s15   ;;  %s2031_s14 = sphi %s2125_s14, %s2742_s14   ;;  %s2027_s13 = sphi %s2123_s13, %s2741_s13  }
  0x15   : > { %2691 = sst [smem:[#allocation28_spill]] %s2035_s15  ;;  %p1357_p0 = scmp.ge.s32.totalorder %s2047_s18, 1 }
  0x16   : > { %2692 = sst [smem:[#allocation29_spill]] %s2039_s16  ;;  %p2660_p1 = scmp.eq.s32.totalorder %s2154_s19, 0 }
  0x17   : > { %2693 = sst [smem:[#allocation30_spill]] %s2047_s18  ;;  %p315_p2 = scmp.lt.s32.totalorder %s2047_s18, 3 }
  0x18   : > { %s2049_s21 = smov [#allocation8]   ;;  %s2050_s24 = smov [#allocation11]  }
  0x19   : > { %p2159_p3 = pnand %p1357_p0, %p315_p2  ;;  %s327_s22 = sshll.u32 %s2049_s21, 4  ;;  %s2163_s22 = int_to_ptr.vmem [resolvable:$true] %s327_s22 }
  0x1a   : > { %s353_s25 = sshll.u32 %s2050_s24, 4  ;;  %s2051_s26 = smov [#allocation14]   ;;  %s2174_s25 = int_to_ptr.vmem [resolvable:$true] %s353_s25 }
  0x1b   : > { %s2694_s20 = scalar_select %p2159_p3, 1, 0 }
  0x1c   : > { %p1529_p4 = pneg %p2159_p3  ;;  %s2176_s27 = sshll.u32 %s2051_s26, 4  ;;  %s381_s27 = int_to_ptr.vmem [resolvable:$true] %s2176_s27 }
  0x1d   : > { %2695 = sst [smem:[#allocation31_spill]] %s2694_s20  ;;  %s2697_s3 = sld [smem:[#allocation36_spill]] }
  0x1e   : > { %p2170_p6 = pnand %p1529_p4, %p2660_p1 }
  0x20   : > { %s2696_s23 = scalar_select %p2170_p6, 1, 0 }
  0x21   : > { %p2186_p8 = pneg %p2170_p6 }
  0x23   : > { %s1659_s30 = scalar_lea.hbm %s2697_s3, 256 }
  0x24   : > { %p1660_p7 = scmp.ne.s32.totalorder %s2697_s3, %s1659_s30  ;;  %p1666_p11 = scmp.lt.u32.totalorder %s1659_s30, %s2697_s3 }
  0x25   : > { %s2698_s21 = scalar_select %p2186_p8, 1, 0 }
  0x26   : > { %p1662_p9 = pnand %p2186_p8, %p1660_p7 }
  0x28   : > { %p1663_p10 = pneg %p1662_p9 }
  0x2a   : > { %p1668_p12 = pnand %p1666_p11, %p1663_p10 }
  0x2c   : > { %1671 = shalt.err (!%p1668_p12)
}
  0x2d   : > { %s1672_s28 = scalar_lea.vmem %s2163_s22, 256  ;;  %p1680_p4 = scmp.lt.s32.totalorder %s2163_s22, %s2163_s22 }
  0x2e   : > { %p1673_p13 = scmp.ne.s32.totalorder %s2163_s22, %s1672_s28  ;;  %p1681_p5 = scmp.lt.s32.totalorder %s1672_s28, %s1672_s28 }
  0x30   : > { %p1675_p0 = pnand %p1673_p13, %p2186_p8  ;;  %p1682_p7 = por %p1681_p5, %p1680_p4 }
  0x32   : > { %p1676_p2 = pneg %p1675_p0 }
  0x34   : > { %p1683_p9 = pnand %p1682_p7, %p1676_p2 }
  0x36   : > { %1686 = shalt.err (!%p1683_p9)
}
  0x37   : > { %s2662_s29 = smov 64   ;;  %s2664_s30 = smov 4  }
  0x38   : > { %1532 = dma.hbm_to_vmem [thread:$0]  (!%p2170_p6), %s2697_s3, 256, %s2163_s22, [#allocation9], %s2662_s29, %s2662_s29, %s2664_s30  }
  0x39   : > { %s2699_s5 = sld [smem:[#allocation37_spill]] }
  0x3f   : > { %s1687_s28 = scalar_lea.hbm %s2699_s5, 256 }
  0x40   : > { %p1688_p5 = scmp.ne.s32.totalorder %s2699_s5, %s1687_s28  ;;  %p1694_p12 = scmp.lt.u32.totalorder %s1687_s28, %s2699_s5 }
  0x42   : > { %p1690_p10 = pnand %p1688_p5, %p2186_p8 }
  0x44   : > { %p1691_p11 = pneg %p1690_p10 }
  0x46   : > { %p1696_p13 = pnand %p1694_p12, %p1691_p11 }
  0x48   : > { %1699 = shalt.err (!%p1696_p13)
}
  0x49   : > { %s1700_s22 = scalar_lea.vmem %s2174_s25, 256  ;;  %p1708_p7 = scmp.lt.s32.totalorder %s2174_s25, %s2174_s25 }
  0x4a   : > { %p1701_p0 = scmp.ne.s32.totalorder %s2174_s25, %s1700_s22  ;;  %p1709_p9 = scmp.lt.s32.totalorder %s1700_s22, %s1700_s22 }
  0x4c   : > { %p1703_p2 = pnand %p1701_p0, %p2186_p8  ;;  %p1710_p5 = por %p1709_p9, %p1708_p7 }
  0x4e   : > { %p1704_p4 = pneg %p1703_p2 }
  0x50   : > { %p1711_p10 = pnand %p1710_p5, %p1704_p4 }
  0x52   : > { %1714 = shalt.err (!%p1711_p10)
}
  0x53   : > { %1538 = dma.hbm_to_vmem [thread:$0]  (!%p2170_p6), %s2699_s5, 256, %s2174_s25, [#allocation12], %s2662_s29, %s2662_s29, %s2664_s30  }
  0x54   : > { %s2700_s7 = sld [smem:[#allocation38_spill]] }
  0x5a   : > { %s1715_s11 = scalar_lea.hbm %s2700_s7, 16 }
  0x5b   : > { %p1716_p11 = scmp.ne.s32.totalorder %s2700_s7, %s1715_s11  ;;  %p1722_p0 = scmp.lt.u32.totalorder %s1715_s11, %s2700_s7 }
  0x5d   : > { %p1718_p12 = pnand %p1716_p11, %p2186_p8 }
  0x5f   : > { %p1719_p13 = pneg %p1718_p12 }
  0x61   : > { %p1724_p2 = pnand %p1722_p0, %p1719_p13 }
  0x63   : > { %1727 = shalt.err (!%p1724_p2)
}
  0x64   : > { %s1728_s22 = scalar_lea.vmem %s381_s27, 16  ;;  %s1735_s25 = scalar_lea.vmem %s381_s27, 32 }
  0x65   : > { %p1729_p4 = scmp.ne.s32.totalorder %s381_s27, %s1728_s22  ;;  %p1736_p5 = scmp.lt.s32.totalorder %s381_s27, %s381_s27 }
  0x66   : > { %p1737_p10 = scmp.lt.s32.totalorder %s1735_s25, %s1728_s22 }
  0x67   : > { %p1731_p7 = pnand %p1729_p4, %p2186_p8 }
  0x68   : > { %p1738_p1 = por %p1737_p10, %p1736_p5 }
  0x69   : > { %p1732_p9 = pneg %p1731_p7 }
  0x6b   : > { %p1739_p3 = pnand %p1738_p1, %p1732_p9 }
  0x6d   : > { %1742 = shalt.err (!%p1739_p3)
}
  0x6e   : > { %1544 = dma.hbm_to_vmem [thread:$0]  (!%p2170_p6), %s2700_s7, 16, %s381_s27, [#allocation15]  }
  0x6f   : > { %s1356_s16 = sadd.s32 4294967294, %s2047_s18   ;;  %s48_s20 = sadd.s32 1, %s2043_s17 }
  0x70   : > { %s57_s11 = sadd.s32 1, %s2035_s15  ;;  %p50_p1 = scmp.ge.s32.totalorder %s48_s20, 2 }
  0x71   : > { %p64_p3 = scmp.ne.s32.totalorder %s2035_s15, %s2031_s14  ;;  %p65_p11 = scmp.eq.s32.totalorder %s2047_s18, 0 }
  0x72   : > { %p70_p12 = scmp.ne.s32.totalorder %s2031_s14, %s2027_s13  ;;  %s2746_s20 = smov (%p50_p1, %s48_s20), 0 }
  0x73   : > { %2701 = sst [smem:[#allocation32_spill]] %s2746_s20  ;;  %p66_p13 = por %p65_p11, %p64_p3 }
  0x74   : > { %p2702_p0 = scmp.eq.s32.totalorder %s2154_s19, 0  ;;  %s52_s27 = ssub.s32 %s2043_s17, %s2746_s20 }
  0x75   : > { %p274_p4 = scmp.eq.s32.totalorder %s2154_s19, 1  ;;  %p55_p7 = scmp.eq.s32.totalorder %s52_s27, 0 }
  0x76   : > { %p2267_p2 = por %p2702_p0, %p70_p12  ;;  %p280_p9 = scmp.eq.s32.totalorder %s1356_s16, 1 }
  0x77   : > { %p2274_p5 = por %p274_p4, %p64_p3  ;;  %p1571_p10 = scmp.lt.s32.totalorder %s2047_s18, 2 }
  0x78   : > { %s2703_s12 = scalar_select %p2267_p2, 1, 0 }
  0x79   : > { %s2704_s24 = scalar_select %p2274_p5, 1, 0 }
  0x7a   : > { %s2280_s26 = scalar_select %p55_p7, %s2035_s15, %s57_s11  }
  0x7b   : > { %p2282_p1 = por %p280_p9, %p70_p12  ;;  %s2287_s22 = sand.u32 1, %s2035_s15  }
  0x7c   : > { %2705 = sst [smem:[#allocation33_spill]] %s2280_s26  ;;  %p2289_p11 = pnand %p1571_p10, %p66_p13 }
  0x7d   : > { %s2706_s28 = scalar_select %p2282_p1, 1, 0 }
  0x7e   : > { %s2708_s25 = scalar_select %p2289_p11, 1, 0 }
  0x7f   : > { %2707 = sst [smem:[#allocation34_spill]] %s2706_s28  ;;  %s421_s9 = sand.u32 1, %s2047_s18  }
  0x80   : > { %s2666_s10 = sshll.u32 %s2287_s22, 2  ;;  %s2667_s16 = sshll.u32 %s2043_s17, 6 }
  0x81   : > { %s425_s27 = scalar_lea.vmem [#allocation5], %s2666_s10  ;;  %s2709_s1 = sld [smem:[#allocation35_spill]] }
  0x82   : > { %s432_s11 = sshll.u32 %s425_s27, 4  ;;  %s2307_s5 = scalar_lea.sflag [#allocation6], %s421_s9  ;;  %s2305_s11 = int_to_ptr.vmem [resolvable:$true] %s432_s11 }
  0x83   : > { %p2313_p12 = pneg %p2289_p11 }
  0x85   : > { %s2710_s10 = scalar_select %p2313_p12, 1, 0 }
  0x87   : > { %s2303_s3 = scalar_lea.hbm %s2709_s1, %s2667_s16  ;;  %s1748_s27 = scalar_lea.hbm %s2709_s1, 128 }
  0x88   : > { %s1743_s7 = scalar_lea.hbm %s2303_s3, 64  ;;  %p1749_p4 = scmp.lt.u32.totalorder %s2303_s3, %s2709_s1 }
  0x89   : > { %p1744_p3 = scmp.ne.s32.totalorder %s2303_s3, %s1743_s7  ;;  %p1750_p7 = scmp.lt.u32.totalorder %s1748_s27, %s1743_s7 }
  0x8a   : > { %p1752_p10 = scmp.lt.u32.totalorder %s1743_s7, %s2303_s3 }
  0x8b   : > { %p1746_p13 = pnand %p2313_p12, %p1744_p3  ;;  %p1751_p9 = por %p1750_p7, %p1749_p4 }
  0x8d   : > { %p1747_p0 = pneg %p1746_p13  ;;  %p1753_p1 = por %p1752_p10, %p1751_p9 }
  0x8f   : > { %p1754_p5 = pnand %p1753_p1, %p1747_p0 }
  0x91   : > { %1757 = shalt.err (!%p1754_p5)
}
  0x92   : > { %s1758_s9 = scalar_lea.vmem %s2305_s11, 64  ;;  %s2054_s29 = smov [#allocation5]  }
  0x93   : > { %p1759_p3 = scmp.ne.s32.totalorder %s2305_s11, %s1758_s9  ;;  %s1763_s30 = sshll.u32 %s2054_s29, 4  ;;  %s1764_s30 = int_to_ptr.vmem [resolvable:$false] %s1763_s30 }
  0x94   : > { %s1765_s20 = scalar_lea.vmem %s1764_s30, 128  ;;  %p1766_p6 = scmp.lt.s32.totalorder %s2305_s11, %s1764_s30 }
  0x95   : > { %p1761_p13 = pnand %p1759_p3, %p2313_p12  ;;  %p1767_p8 = scmp.lt.s32.totalorder %s1765_s20, %s1758_s9 }
  0x97   : > { %p1762_p2 = pneg %p1761_p13  ;;  %p1768_p4 = por %p1767_p8, %p1766_p6 }
  0x99   : > { %p1769_p7 = pnand %p1768_p4, %p1762_p2 }
  0x9b   : > { %1772 = shalt.err (!%p1769_p7)
}
  0x9c   : > { %1554 = dma.hbm_to_vmem [thread:$0]  (!%p2289_p11), %s2303_s3, 64, %s2305_s11, %s2307_s5  }
  0x9d   : > { %s2711_s7 = sshll.u32 %s2043_s17, 6  ;;  %s2055_s1 = smov [#allocation10]  }
  0x9e   : > { %s2342_s29 = scalar_lea.hbm %s2647_s2, %s2711_s7  ;;  %s340_s30 = sshll.u32 %s2055_s1, 4  ;;  %s341_s30 = int_to_ptr.vmem [resolvable:$true] %s340_s30 }
  0x9f   : > { %s2056_s9 = smov [#allocation13]   ;;  %s1773_s18 = scalar_lea.hbm %s2649_s4, 256 }
  0xa0   : > { %s366_s20 = sshll.u32 %s2056_s9, 4  ;;  %p1774_p6 = scmp.ne.s32.totalorder %s2649_s4, %s1773_s18  ;;  %s2344_s20 = int_to_ptr.vmem [resolvable:$true] %s366_s20 }
  0xa1   : > { %p2712_p8 = scmp.ne.s32.totalorder %s2698_s21, 0  ;;  %p1780_p1 = scmp.lt.u32.totalorder %s1773_s18, %s2649_s4 }
  0xa3   : > { %p1776_p2 = pnand %p1774_p6, %p2712_p8 }
  0xa5   : > { %p1777_p5 = pneg %p1776_p2 }
  0xa7   : > { %p1782_p0 = pnand %p1780_p1, %p1777_p5 }
  0xa9   : > { %1785 = shalt.err (!%p1782_p0)
}
  0xaa   : > { %s1786_s1 = scalar_lea.vmem %s341_s30, 256  ;;  %p1794_p13 = scmp.lt.s32.totalorder %s341_s30, %s341_s30 }
  0xab   : > { %p1787_p9 = scmp.ne.s32.totalorder %s341_s30, %s1786_s1  ;;  %p1795_p4 = scmp.lt.s32.totalorder %s1786_s1, %s1786_s1 }
  0xad   : > { %p1789_p10 = pnand %p1787_p9, %p2712_p8  ;;  %p1796_p7 = por %p1795_p4, %p1794_p13 }
  0xaf   : > { %p1790_p3 = pneg %p1789_p10 }
  0xb1   : > { %p1797_p11 = pnand %p1796_p7, %p1790_p3 }
  0xb3   : > { %1800 = shalt.err (!%p1797_p11)
}
  0xb4   : > { %p2713_p6 = scmp.ne.s32.totalorder %s2696_s23, 0  ;;  %s2714_s13 = smov 4  }
  0xb5   : > { %s2715_s15 = smov 64   ;;  %s1801_s16 = scalar_lea.hbm %s2651_s6, 256 }
  0xb6   : > { %1535 = dma.hbm_to_vmem [thread:$0]  (!%p2713_p6), %s2649_s4, 256, %s341_s30, [#allocation9], %s2715_s15, %s2715_s15, %s2714_s13  }
  0xb7   : > { %p1802_p2 = scmp.ne.s32.totalorder %s2651_s6, %s1801_s16  ;;  %p1808_p1 = scmp.lt.u32.totalorder %s1801_s16, %s2651_s6 }
  0xb9   : > { %p1804_p11 = pnand %p1802_p2, %p2712_p8 }
  0xbb   : > { %p1805_p5 = pneg %p1804_p11 }
  0xbd   : > { %p1810_p0 = pnand %p1808_p1, %p1805_p5 }
  0xbf   : > { %1813 = shalt.err (!%p1810_p0)
}
  0xc0   : > { %s1814_s30 = scalar_lea.vmem %s2344_s20, 256  ;;  %p1822_p13 = scmp.lt.s32.totalorder %s2344_s20, %s2344_s20 }
  0xc1   : > { %p1815_p9 = scmp.ne.s32.totalorder %s2344_s20, %s1814_s30  ;;  %p1823_p4 = scmp.lt.s32.totalorder %s1814_s30, %s1814_s30 }
  0xc3   : > { %p1817_p10 = pnand %p1815_p9, %p2712_p8  ;;  %p1824_p7 = por %p1823_p4, %p1822_p13 }
  0xc5   : > { %p1818_p3 = pneg %p1817_p10 }
  0xc7   : > { %p1825_p2 = pnand %p1824_p7, %p1818_p3 }
  0xc9   : > { %1828 = shalt.err (!%p1825_p2)
}
  0xca   : > { %1541 = dma.hbm_to_vmem [thread:$0]  (!%p2713_p6), %s2651_s6, 256, %s2344_s20, [#allocation12], %s2715_s15, %s2715_s15, %s2714_s13  }
  0xcb   : > { %s2057_s18 = smov [#allocation16]   ;;  %s1365_s7 = sshll.u32 %s2287_s22, 3 }
  0xcc   : > { %s391_s28 = sshll.u32 %s2057_s18, 4  ;;  %s1829_s9 = scalar_lea.hbm %s2653_s8, 16  ;;  %s392_s28 = int_to_ptr.vmem [resolvable:$true] %s391_s28 }
  0xcd   : > { %p1830_p11 = scmp.ne.s32.totalorder %s2653_s8, %s1829_s9  ;;  %p1836_p0 = scmp.lt.u32.totalorder %s1829_s9, %s2653_s8 }
  0xcf   : > { %p1832_p5 = pnand %p1830_p11, %p2712_p8 }
  0xd1   : > { %p1833_p1 = pneg %p1832_p5 }
  0xd3   : > { %p1838_p9 = pnand %p1836_p0, %p1833_p1 }
  0xd5   : > { %1841 = shalt.err (!%p1838_p9)
}
  0xd6   : > { %s1842_s20 = scalar_lea.vmem %s392_s28, 16  ;;  %s1849_s13 = scalar_lea.vmem %s392_s28, 32 }
  0xd7   : > { %p1843_p10 = scmp.ne.s32.totalorder %s392_s28, %s1842_s20  ;;  %p1850_p4 = scmp.lt.s32.totalorder %s392_s28, %s392_s28 }
  0xd8   : > { %p1851_p7 = scmp.lt.s32.totalorder %s1849_s13, %s1842_s20 }
  0xd9   : > { %p1845_p3 = pnand %p1843_p10, %p2712_p8 }
  0xda   : > { %p1852_p2 = por %p1851_p7, %p1850_p4 }
  0xdb   : > { %p1846_p13 = pneg %p1845_p3 }
  0xdd   : > { %p1853_p12 = pnand %p1852_p2, %p1846_p13 }
  0xdf   : > { %1856 = shalt.err (!%p1853_p12)
}
  0xe0   : > { %1547 = dma.hbm_to_vmem [thread:$0]  (!%p2713_p6), %s2653_s8, 16, %s392_s28, [#allocation15]  }
  0xe1   : > { %s1366_s18 = sshll.u32 %s2043_s17, 7  ;;  %s406_s16 = scalar_lea.vmem [#allocation2], %s1365_s7 }
  0xe2   : > { %s414_s21 = sshll.u32 %s406_s16, 4  ;;  %s2416_s3 = scalar_lea.hbm %s2645_s0, %s1366_s18  ;;  %s415_s21 = int_to_ptr.vmem [resolvable:$true] %s414_s21 }
  0xe3   : > { %s403_s23 = scalar_lea.sflag [#allocation3], %s2287_s22  ;;  %s1857_s11 = scalar_lea.hbm %s2416_s3, 128 }
  0xe4   : > { %p1858_p12 = scmp.ne.s32.totalorder %s2416_s3, %s1857_s11  ;;  %p2716_p8 = scmp.ne.s32.totalorder %s2710_s10, 0 }
  0xe5   : > { %s1862_s7 = scalar_lea.hbm %s2645_s0, 256  ;;  %p1863_p6 = scmp.lt.u32.totalorder %s2416_s3, %s2645_s0 }
  0xe6   : > { %p1860_p11 = pnand %p1858_p12, %p2716_p8  ;;  %p1864_p1 = scmp.lt.u32.totalorder %s1862_s7, %s1857_s11 }
  0xe7   : > { %p1866_p9 = scmp.lt.u32.totalorder %s1857_s11, %s2416_s3 }
  0xe8   : > { %p1861_p5 = pneg %p1860_p11  ;;  %p1865_p0 = por %p1864_p1, %p1863_p6 }
  0xea   : > { %p1867_p10 = por %p1866_p9, %p1865_p0 }
  0xec   : > { %p1868_p3 = pnand %p1867_p10, %p1861_p5 }
  0xee   : > { %1871 = shalt.err (!%p1868_p3)
}
  0xef   : > { %s1872_s13 = scalar_lea.vmem %s415_s21, 128  ;;  %s2058_s15 = smov [#allocation2]  }
  0xf0   : > { %p1873_p13 = scmp.ne.s32.totalorder %s415_s21, %s1872_s13  ;;  %s1877_s26 = sshll.u32 %s2058_s15, 4  ;;  %s1878_s26 = int_to_ptr.vmem [resolvable:$false] %s1877_s26 }
  0xf1   : > { %s1879_s18 = scalar_lea.vmem %s1878_s26, 256  ;;  %p1880_p2 = scmp.lt.s32.totalorder %s415_s21, %s1878_s26 }
  0xf2   : > { %p1875_p4 = pnand %p1873_p13, %p2716_p8  ;;  %p1881_p12 = scmp.lt.s32.totalorder %s1879_s18, %s1872_s13 }
  0xf4   : > { %p1876_p7 = pneg %p1875_p4  ;;  %p1882_p11 = por %p1881_p12, %p1880_p2 }
  0xf6   : > { %p1883_p1 = pnand %p1882_p11, %p1876_p7 }
  0xf8   : > { %1886 = shalt.err (!%p1883_p1)
}
  0xf9   : > { %p2717_p6 = scmp.ne.s32.totalorder %s2708_s25, 0  ;;  %s2718_s16 = sshll.u32 %s2287_s22, 2 }
  0xfa   : > { %s443_s27 = scalar_lea.vmem [#allocation7], %s2718_s16  ;;  %s1887_s11 = scalar_lea.hbm %s2342_s29, 64 }
  0xfb   : > { %1551 = dma.hbm_to_vmem [thread:$0]  (!%p2717_p6), %s2416_s3, 128, %s415_s21, %s403_s23  }
  0xfc   : > { %s450_s9 = sshll.u32 %s443_s27, 4  ;;  %p1888_p5 = scmp.ne.s32.totalorder %s2342_s29, %s1887_s11  ;;  %s451_s9 = int_to_ptr.vmem [resolvable:$true] %s450_s9 }
  0xfd   : > { %s1892_s7 = scalar_lea.hbm %s2647_s2, 128  ;;  %p1893_p10 = scmp.lt.u32.totalorder %s2342_s29, %s2647_s2 }
  0xfe   : > { %p1890_p0 = pnand %p1888_p5, %p2716_p8  ;;  %p1894_p3 = scmp.lt.u32.totalorder %s1892_s7, %s1887_s11 }
  0xff   : > { %p1896_p4 = scmp.lt.u32.totalorder %s1887_s11, %s2342_s29 }
 0x100   : > { %p1891_p9 = pneg %p1890_p0  ;;  %p1895_p13 = por %p1894_p3, %p1893_p10 }
 0x102   : > { %p1897_p7 = por %p1896_p4, %p1895_p13 }
 0x104   : > { %p1898_p2 = pnand %p1897_p7, %p1891_p9 }
 0x106   : > { %1901 = shalt.err (!%p1898_p2)
}
 0x107   : > { %s1902_s22 = scalar_lea.vmem %s451_s9, 64  ;;  %s2059_s21 = smov [#allocation7]  }
 0x108   : > { %p1903_p12 = scmp.ne.s32.totalorder %s451_s9, %s1902_s22  ;;  %s1907_s3 = sshll.u32 %s2059_s21, 4  ;;  %s1908_s3 = int_to_ptr.vmem [resolvable:$false] %s1907_s3 }
 0x109   : > { %s1909_s23 = scalar_lea.vmem %s1908_s3, 128  ;;  %p1910_p5 = scmp.lt.s32.totalorder %s451_s9, %s1908_s3 }
 0x10a   : > { %p1905_p11 = pnand %p1903_p12, %p2716_p8  ;;  %p1911_p0 = scmp.lt.s32.totalorder %s1909_s23, %s1902_s22 }
 0x10c   : > { %p1906_p1 = pneg %p1905_p11  ;;  %p1912_p6 = por %p1911_p0, %p1910_p5 }
 0x10e   : > { %p1913_p3 = pnand %p1912_p6, %p1906_p1 }
 0x110   : > { %1916 = shalt.err (!%p1913_p3)
}
 0x111   : > { %p2719_p10 = scmp.ne.s32.totalorder %s2708_s25, 0  ;;  %s2720_s13 = sld [smem:[#allocation31_spill]] }
 0x113   : > { %1557 = dma.hbm_to_vmem [thread:$0]  (!%p2719_p10), %s2342_s29, 64, %s451_s9, %s2307_s5  }
 0x117   : > { %p2721_p9 = scmp.ne.s32.totalorder %s2720_s13, 0 }
 0x118   : > { %s2459_s10 = sand.u32 (!%p2721_p9), 1, %s2031_s14   ;;  %p2722_p8 = scmp.ne.s32.totalorder (!%p2721_p9), %s2703_s12, 0 }
 0x119   : > { %459 = sbr.rel (%p2721_p9) target bundleno = 2352 (0x930), region = 56  ;;  %s2462_s15 = sshll.u32 (!%p2721_p9), %s2459_s10, 3 }
 0x11a   : > { %s462_s26 = scalar_lea.sflag (!%p2721_p9), [#allocation3], %s2459_s10  ;;  %s465_s18 = scalar_lea.vmem (!%p2721_p9), [#allocation2], %s2462_s15 }
 0x120   : > { %1998 = dma.done.wait (%p2722_p8), %s462_s26, 128  }
 0x121   : > { %2000 = vsyncadd (%p2722_p8), %s462_s26, 4294967168  ;;  %s470_s5 = sand.u32 1, %s2154_s19   ;;  %s1373_s25 = sshll.u32 %s2459_s10, 2 }
 0x122   : > { %s471_s29 = scalar_lea.sflag [#allocation6], %s470_s5  ;;  %s474_s16 = scalar_lea.vmem [#allocation5], %s1373_s25 }
 0x123   : > { %2002 = dma.done.wait (%p2722_p8), %s471_s29, 128  }
 0x124   : > { %2004 = vsyncadd (%p2722_p8), %s471_s29, 4294967168  ;;  %s2476_s27 = scalar_lea.vmem [#allocation7], %s1373_s25  ;;  %p2723_p6 = scmp.eq.s32.totalorder %s2154_s19, 0 }
 0x126   : > { %2006 = dma.done.wait (%p2723_p6), [#allocation9], 512   ;;  %p2724_p13 = pmov %p2723_p6 }
 0x127   : > { %p2725_p4 = pmov %p2723_p6 }
 0x128   : > { %2008 = vsyncadd (%p2724_p13), [#allocation9], 4294966784 }
 0x129   : > { %2010 = dma.done.wait (%p2725_p4), [#allocation12], 512   ;;  %p2726_p7 = pmov %p2725_p4 }
 0x12a   : > { %p2727_p2 = pmov %p2725_p4 }
 0x12b   : > { %2012 = vsyncadd (%p2726_p7), [#allocation12], 4294966784 }
 0x12c   : > { %2014 = dma.done.wait (%p2727_p2), [#allocation15], 32   ;;  %p2728_p12 = pmov %p2727_p2 }
 0x12d   : > { %v2060_v0 = vmov 0.0   ;;  %vm2061_vm0 = vmmov 0   ;;  %v1641_v1 = vld [vmem:[#allocation10] sm:$0xff]   ;;  %v1642_v2 = vld [vmem:[#allocation10 + $0x8] sm:$0xff]   ;;  %v1643_v3 = vld [vmem:[#allocation8] sm:$0xff]   ;;  %vm580_vm1 = vcmask 261120  }
 0x12e   : > { %2016 = vsyncadd (%p2728_p12), [#allocation15], 4294967264  ;;  %1438 = vmatprep.subr.bf16.mxu1 %v2060_v0  ;;  %1430 = vmatprep.subr.bf16.mxu0 %v2060_v0  ;;  %v562_v4 = vld [vmem:[%s474_s16] sm:$0xf]  ;;  %v1644_v5 = vld [vmem:[#allocation8 + $0x8] sm:$0xff]   ;;  %vm745_vm2 = vcmask 130048  }
 0x12f   : > { %1442 = vmatprep.mubr.msk.bf16.mxu1 %vm2061_vm0, %v2060_v0  ;;  %1434 = vmatprep.mubr.msk.bf16.mxu0 %vm2061_vm0, %v2060_v0  ;;  %v2499_v6 = vld [vmem:[%s465_s18] sm:$0xff]  ;;  %s2062_s19 = smov 112   ;;  %v563_v21 = vld [vmem:[%s2476_s27] sm:$0xf]  ;;  %vm792_vm3 = vcmask 64512   ;;  %vm810_vm4 = vcmask 1043456  }
 0x130   : > { %1439 = vmatpush3.bf16.msra.mxu1 %v1641_v1  ;;  %1431 = vmatpush3.bf16.msra.mxu0 %v1643_v3  ;;  %v561_v7 = vpack.c.bf16 %v2499_v6, %v2499_v6  ;;  %v1645_v19 = vld [vmem:[#allocation11] sm:$0xff]   ;;  %v1646_v20 = vld [vmem:[#allocation11 + $0x8] sm:$0xff]   ;;  %vm805_vm5 = vcmask 60416   ;;  %s2532_s12 = scalar_lea.vmem [#allocation18], %s2462_s15  ;;  %v1647_v45 = vld [vmem:[#allocation13] sm:$0xff]   ;;  %s2729_s9 = sld [smem:[#allocation29_spill]] }
 0x131   : > { %1440 = vmatprep.subr.bf16.mxu1 %v2060_v0  ;;  %1432 = vmatprep.subr.bf16.mxu0 %v2060_v0  ;;  %v1648_v3 = vld [vmem:[#allocation13 + $0x8] sm:$0xff]   ;;  %s1139_s28 = sshll.u32 %s2532_s12, 4  ;;  %s2730_s1 = sld [smem:[#allocation40_spill]]  ;;  %s2564_s28 = int_to_ptr.vmem [resolvable:$true] %s1139_s28 }
 0x132   : > { %s1112_s22 = scalar_lea.sflag [#allocation19], %s2459_s10  ;;  %s1917_s21 = scalar_lea.vmem %s2564_s28, 128 }
 0x133   : > { %p1918_p11 = scmp.ne.s32.totalorder %s2564_s28, %s1917_s21  ;;  %p2731_p1 = scmp.ne.s32.totalorder %s2704_s24, 0 }
 0x134   : > { %1441 = vmatpush3.bf16.msra.mxu1 %v1642_v2  ;;  %1433 = vmatpush3.bf16.msra.mxu0 %v1644_v5  ;;  %s2063_s3 = smov [#allocation18]  }
 0x135   : > { %1454 = vmatprep.subr.bf16.mxu1 %v2060_v0  ;;  %1446 = vmatprep.subr.bf16.mxu0 %v2060_v0  ;;  %p1919_p5 = pnand %p1918_p11, %p2731_p1  ;;  %s1921_s23 = sshll.u32 %s2063_s3, 4  ;;  %s1922_s23 = int_to_ptr.vmem [resolvable:$false] %s1921_s23 }
 0x136   : > { %s1406_s11 = sshll.u32 %s2729_s9, 6  ;;  %s1923_s13 = scalar_lea.vmem %s1922_s23, 256 }
 0x137   : > { %1443 = vmatmul.mubr.msk.bf16.vlgmr.msra.gmra.mrb[0].mxu1 %vm580_vm1, %v562_v4  ;;  %1435 = vmatmul.mubr.msk.bf16.vlgmr.msra.gmra.mrb[0].mxu0 %vm580_vm1, %v561_v7  ;;  %s2562_s20 = scalar_lea.hbm %s2730_s1, %s1406_s11  ;;  %p1920_p0 = pneg %p1919_p5 }
 0x138   : > { %1456 = vmatprep.mubr.msk.bf16.mxu1 %vm2061_vm0, %v2060_v0  ;;  %1450 = vmatprep.mubr.msk.bf16.mxu0 %vm2061_vm0, %v2060_v0  ;;  %p1924_p3 = scmp.lt.s32.totalorder %s2564_s28, %s1922_s23  ;;  %p1925_p10 = scmp.lt.s32.totalorder %s1923_s13, %s1917_s21 }
 0x139   : > { %1447 = vmatpush3.bf16.msra.mxu0 %v1645_v19 }
 0x13a   : > { %1448 = vmatprep.subr.bf16.mxu0 %v2060_v0  ;;  %p1926_p9 = por %p1925_p10, %p1924_p3 }
 0x13c   : > { %p1927_p8 = pnand %p1926_p9, %p1920_p0 }
 0x13d   : > { %1449 = vmatpush3.bf16.msra.mxu0 %v1646_v20 }
 0x13e   : > { %1460 = vmatprep.subr.bf16.mxu0 %v2060_v0 }
 0x140   : > { %1451 = vmatmul.mubr.msk.bf16.vlgmr.msra.gmra.mrb[4].mxu0 %vm580_vm1, %v563_v21 }
 0x141   : > { %1462 = vmatprep.mubr.msk.bf16.mxu0 %vm2061_vm0, %v2060_v0 }
 0x20a   : > { %v677_v8 = vpop.f32.mrb[0].mxu1  ;;  %v618_v12 = vpop.f32.mrb[0].mxu0 }
 0x20b   : > { %v743_v9 = vpack.c.bf16 %v677_v8, %v677_v8  ;;  %v1444_v10 = vpop.f32.mrb[1].mxu1  ;;  %v742_v15 = vpack.c.bf16 %v618_v12, %v618_v12  ;;  %v1436_v16 = vpop.f32.mrb[1].mxu0 }
 0x20c   : > { %v680_v11 = vpop.f32.mrb[2].mxu1  ;;  %v621_v17 = vpop.f32.mrb[2].mxu0 }
 0x20d   : > { %v750_v13 = vsel %vm745_vm2, %v743_v9, 0  ;;  %911 = vrot.lane.b32.xlu1 %v743_v9, %s2062_s19  ;;  %v1445_v14 = vpop.f32.mrb[3].mxu1  ;;  %v1437_v18 = vpop.f32.mrb[3].mxu0 }
 0x20e   : > { %1455 = vmatpush3.bf16.xpose.msra.mxu1 %v750_v13 }
 0x20f   : > { %1466 = vmatprep.subr.bf16.mxu1 %v2060_v0 }
 0x211   : > { %908 = vrot.lane.b32.xlu1 %v742_v15, %s2062_s19 }
 0x213   : > { %v736_v32 = vpop.f32.mrb[4].mxu0 }
 0x214   : > { %v1452_v33 = vpop.f32.mrb[5].mxu0  ;;  %v744_v35 = vpack.c.bf16 %v736_v32, %v736_v32 }
 0x215   : > { %1457 = vmatmul.mubr.msk.bf16.vlgmr.msra.gmra.mrb[4].mxu1 %vm745_vm2, %v742_v15  ;;  %v739_v34 = vpop.f32.mrb[6].mxu0 }
 0x216   : > { %1468 = vmatprep.mubr.msk.bf16.mxu1 %vm2061_vm0, %v2060_v0  ;;  %v1453_v36 = vpop.f32.mrb[7].mxu0  ;;  %v812_v37 = vsel %vm810_vm4, %v744_v35, 0  ;;  %1467 = vmatpush3.bf16.msra.mxu1 %v1647_v45 }
 0x217   : > { %1461 = vmatpush3.bf16.msra.mxu0 %v812_v37  ;;  %1478 = vmatprep.subr.bf16.mxu1 %v2060_v0 }
 0x218   : > { %1472 = vmatprep.subr.bf16.mxu0 %v2060_v0 }
 0x27f   : > { %v912_v41 = vpop.permute.xlu1 %911 }
 0x280   : > { %v917_v43 = vsel %vm745_vm2, %v912_v41, 0 }
 0x283   : > { %v909_v44 = vpop.permute.xlu1 %908 }
 0x2e8   : > { %v786_v22 = vpop.f32.mrb[4].mxu1 }
 0x2e9   : > { %v1458_v23 = vpop.f32.mrb[5].mxu1  ;;  %v793_v24 = vsel %vm792_vm3, %v786_v22, -inf }
 0x2ea   : > { %794 = vmax.xlane.f32.xlu0 %v793_v24  ;;  %v789_v25 = vpop.f32.mrb[6].mxu1 }
 0x2eb   : > { %v1459_v26 = vpop.f32.mrb[7].mxu1 }
 0x377   : > { %v795_v27 = vpop.xlane.xlu0 %794 }
 0x378   : > { %v796_v28 = vsub.f32 %v786_v22, %v795_v27 }
 0x37a   : > { %v797_v29 = vmul.f32 1.442695, %v796_v28 }
 0x37c   : > { %1649 = vpow2.f32 %v797_v29 }
 0x386   : > { %v1650_v30 = vpop.eup %1649 }
 0x387   : > { %v799_v31 = vsel %vm792_vm3, %v1650_v30, 0.0 }
 0x388   : > { %800 = vadd.xlane.f32.xlu0 %v799_v31 }
 0x415   : > { %v801_v38 = vpop.xlane.xlu0 %800 }
 0x416   : > { %1651 = vrcp.f32 %v801_v38 }
 0x420   : > { %v1652_v39 = vpop.eup %1651 }
 0x421   : > { %v803_v40 = vmul.f32 %v1652_v39, %v1650_v30 }
 0x423   : > { %v804_v42 = vpack.c.bf16 %v803_v40, %v803_v40 }
 0x425   : > { %1463 = vmatmul.mubr.msk.bf16.vlgmr.msra.gmra.mrb[8].mxu0 %vm792_vm3, %v804_v42  ;;  %806 = vst.msk [vmem:[%s2532_s12] sm:$0xf] %vm805_vm5, %v804_v42 }
 0x426   : > { %1473 = vmatpush3.bf16.xpose.msra.mxu0 %v917_v43  ;;  %1474 = vmatprep.mubr.msk.bf16.mxu0 %vm2061_vm0, %v2060_v0 }
 0x42d   : > { %1475 = vmatmul.mubr.msk.bf16.vlgmr.msra.gmra.mrb[12].mxu0 %vm745_vm2, %v909_v44 }
 0x4f8   : > { %v848_v46 = vpop.f32.mrb[8].mxu0 }
 0x4f9   : > { %v854_v47 = vpack.c.bf16 %v848_v46, %v848_v46  ;;  %v1464_v48 = vpop.f32.mrb[9].mxu0 }
 0x4fa   : > { %v851_v49 = vpop.f32.mrb[10].mxu0 }
 0x4fb   : > { %v1465_v50 = vpop.f32.mrb[11].mxu0  ;;  %1469 = vmatmul.mubr.msk.bf16.vlgmr.msra.gmra.mrb[8].mxu1 %vm745_vm2, %v854_v47 }
 0x4fc   : > { %1480 = vmatprep.mubr.msk.bf16.mxu1 %vm2061_vm0, %v2060_v0 }
 0x500   : > { %v953_v51 = vpop.f32.mrb[12].mxu0 }
 0x501   : > { %v1476_v52 = vpop.f32.mrb[13].mxu0  ;;  %v959_v53 = vsel %vm792_vm3, %v953_v51, -inf }
 0x502   : > { %960 = vmax.xlane.f32.xlu0 %v959_v53  ;;  %v956_v54 = vpop.f32.mrb[14].mxu0 }
 0x503   : > { %v1477_v55 = vpop.f32.mrb[15].mxu0 }
 0x518   : > { %974 = vrot.lane.b32.xlu0 %v744_v35, %s2062_s19 }
 0x58f   : > { %v961_v56 = vpop.xlane.xlu0 %960 }
 0x590   : > { %v962_v57 = vsub.f32 %v953_v51, %v961_v56 }
 0x592   : > { %v963_v58 = vmul.f32 1.442695, %v962_v57 }
 0x593   : > { %v975_v59 = vpop.permute.xlu0 %974 }
 0x594   : > { %1653 = vpow2.f32 %v963_v58  ;;  %v980_v60 = vsel %vm810_vm4, %v975_v59, 0 }
 0x595   : > { %1479 = vmatpush3.bf16.msra.mxu1 %v980_v60 }
 0x596   : > { %1484 = vmatprep.subr.bf16.mxu1 %v2060_v0 }
 0x59e   : > { %v1654_v61 = vpop.eup %1653 }
 0x59f   : > { %v965_v62 = vsel %vm792_vm3, %v1654_v61, 0.0 }
 0x5a0   : > { %966 = vadd.xlane.f32.xlu1 %v965_v62 }
 0x62d   : > { %v967_v63 = vpop.xlane.xlu1 %966 }
 0x62e   : > { %1655 = vrcp.f32 %v967_v63 }
 0x638   : > { %v1656_v1 = vpop.eup %1655 }
 0x639   : > { %v969_v2 = vmul.f32 %v1656_v1, %v1654_v61 }
 0x63b   : > { %v970_v4 = vpack.c.bf16 %v969_v2, %v969_v2 }
 0x63d   : > { %1481 = vmatmul.mubr.msk.bf16.vlgmr.msra.gmra.mrb[12].mxu1 %vm792_vm3, %v970_v4  ;;  %1397 = vst.msk [vmem:[%s2532_s12 + $0x4] sm:$0xf] %vm805_vm5, %v970_v4 }
 0x63e   : > { %1485 = vmatpush3.bf16.msra.mxu1 %v1648_v3  ;;  %1486 = vmatprep.mubr.msk.bf16.mxu1 %vm2061_vm0, %v2060_v0 }
 0x710   : > { %v1016_v5 = vpop.f32.mrb[12].mxu1 }
 0x711   : > { %v1022_v7 = vpack.c.bf16 %v1016_v5, %v1016_v5  ;;  %v1482_v8 = vpop.f32.mrb[13].mxu1 }
 0x712   : > { %v1019_v9 = vpop.f32.mrb[14].mxu1 }
 0x713   : > { %v1483_v10 = vpop.f32.mrb[15].mxu1  ;;  %1487 = vmatmul.mubr.msk.bf16.vlgmr.msra.gmra.mrb[8].mxu1 %vm745_vm2, %v1022_v7 }
 0x7e6   : > { %v1068_v11 = vpop.f32.mrb[8].mxu1 }
 0x7e7   : > { %v1490_v12 = vadd.f32 %v1068_v11, %v2499_v6  ;;  %v1488_v13 = vpop.f32.mrb[9].mxu1 }
 0x7e8   : > { %v1071_v14 = vpop.f32.mrb[10].mxu1 }
 0x7e9   : > { %v1489_v15 = vpop.f32.mrb[11].mxu1  ;;  %v1075_v16 = vsel %vm580_vm1, %v1490_v12, 0.0 }
 0x7ea   : > { %1076 = vadd.xlane.f32.xlu0 %v1075_v16 }
 0x877   : > { %v1077_v0 = vpop.xlane.xlu0 %1076 }
 0x878   : > { %v1079_v17 = vmul.f32 0.03125, %v1077_v0 }
 0x87a   : > { %v1080_v18 = vsub.f32 %v1490_v12, %v1079_v17 }
 0x87c   : > { %v1081_v19 = vmul.f32 %v1080_v18, %v1080_v18 }
 0x87e   : > { %v1082_v20 = vsel %vm580_vm1, %v1081_v19, 0.0 }
 0x87f   : > { %1083 = vadd.xlane.f32.xlu1 %v1082_v20 }
 0x880   : > { %1930 = shalt.err (!%p1927_p8)
}
 0x881   : > { %s1931_s26 = scalar_lea.hbm %s2562_s20, 128  ;;  %s1935_s25 = scalar_lea.hbm %s2730_s1, 256 }
 0x882   : > { %p1932_p6 = scmp.ne.s32.totalorder %s2562_s20, %s1931_s26  ;;  %p1936_p7 = scmp.lt.u32.totalorder %s2562_s20, %s2730_s1 }
 0x883   : > { %p1937_p2 = scmp.lt.u32.totalorder %s1935_s25, %s1931_s26  ;;  %p1939_p11 = scmp.lt.u32.totalorder %s1931_s26, %s2562_s20 }
 0x884   : > { %p1933_p13 = pnand %p1932_p6, %p2731_p1 }
 0x885   : > { %p1938_p12 = por %p1937_p2, %p1936_p7 }
 0x886   : > { %p1934_p4 = pneg %p1933_p13 }
 0x887   : > { %p1940_p5 = por %p1939_p11, %p1938_p12 }
 0x889   : > { %p1941_p0 = pnand %p1940_p5, %p1934_p4 }
 0x88b   : > { %1944 = shalt.err (!%p1941_p0)
}
 0x88c   : > { %s2064_s27 = smov 64   ;;  %s2065_s19 = smov 128   ;;  %v1401_v24 = vld [vmem:[#allocation14] ss:$0 sm:$0xff]  ;;  %v1402_v26 = vld [vmem:[#allocation16] ss:$0 sm:$0xff] }
 0x88d   : > { %s2066_s12 = smov 4   ;;  %s1405_s11 = sshll.u32 %s2729_s9, 7 }
 0x88e   : > { %1526 = dma.vmem_to_hbm [thread:$0]  (%p2731_p1), %s2564_s28, 128, %s2562_s20, %s1112_s22, %s2064_s27, %s2065_s19, %s2066_s12  }
 0x88f   : > { %s551_s30 = scalar_lea.vmem [#allocation17], %s2462_s15  ;;  %s2732_s23 = sld [smem:[#allocation39_spill]] }
 0x890   : > { %s1126_s7 = sshll.u32 %s551_s30, 4  ;;  %s1107_s28 = scalar_lea.sflag [#allocation4], %s2459_s10  ;;  %s2597_s7 = int_to_ptr.vmem [resolvable:$true] %s1126_s7 }
 0x891   : > { %s1945_s20 = scalar_lea.vmem %s2597_s7, 128  ;;  %s2067_s15 = smov [#allocation17]  }
 0x892   : > { %p1946_p3 = scmp.ne.s32.totalorder %s2597_s7, %s1945_s20  ;;  %s1949_s9 = sshll.u32 %s2067_s15, 4  ;;  %s1950_s9 = int_to_ptr.vmem [resolvable:$false] %s1949_s9 }
 0x893   : > { %s1951_s22 = scalar_lea.vmem %s1950_s9, 256  ;;  %p1952_p8 = scmp.lt.s32.totalorder %s2597_s7, %s1950_s9 }
 0x894   : > { %p1947_p10 = pnand %p1946_p3, %p2731_p1  ;;  %p1953_p6 = scmp.lt.s32.totalorder %s1951_s22, %s1945_s20 }
 0x895   : > { %s2595_s13 = scalar_lea.hbm %s2732_s23, %s1405_s11 }
 0x896   : > { %p1948_p9 = pneg %p1947_p10  ;;  %p1954_p13 = por %p1953_p6, %p1952_p8 }
 0x898   : > { %p1955_p4 = pnand %p1954_p13, %p1948_p9 }
 0x90c   : > { %v1084_v6 = vpop.xlane.xlu1 %1083 }
 0x90d   : > { %v1085_v21 = vmul.f32 0.03125, %v1084_v6 }
 0x90f   : > { %v1086_v22 = vadd.f32 1e-05, %v1085_v21 }
 0x911   : > { %1657 = vrsqrt.f32 %v1086_v22 }
 0x91b   : > { %v1658_v23 = vpop.eup %1657 }
 0x91c   : > { %v1088_v25 = vmul.f32 %v1658_v23, %v1080_v18 }
 0x91e   : > { %v1096_v27 = vmul.f32 %v1401_v24, %v1088_v25 }
 0x920   : > { %v1104_v28 = vadd.f32 %v1402_v26, %v1096_v27 }
 0x922   : > { %1105 = vst.msk [vmem:[%s551_s30] sm:$0xff] %vm580_vm1, %v1104_v28 }
 0x923   : > { %1958 = shalt.err (!%p1955_p4)
}
 0x924   : > { %s1959_s10 = scalar_lea.hbm %s2595_s13, 128  ;;  %s1963_s5 = scalar_lea.hbm %s2732_s23, 256 }
 0x925   : > { %p1960_p7 = scmp.ne.s32.totalorder %s2595_s13, %s1959_s10  ;;  %p1964_p11 = scmp.lt.u32.totalorder %s2595_s13, %s2732_s23 }
 0x926   : > { %p1965_p5 = scmp.lt.u32.totalorder %s1963_s5, %s1959_s10  ;;  %p1967_p3 = scmp.lt.u32.totalorder %s1959_s10, %s2595_s13 }
 0x927   : > { %p1961_p2 = pnand %p1960_p7, %p2731_p1 }
 0x928   : > { %p1966_p0 = por %p1965_p5, %p1964_p11 }
 0x929   : > { %p1962_p12 = pneg %p1961_p2 }
 0x92a   : > { %p1968_p10 = por %p1967_p3, %p1966_p0 }
 0x92c   : > { %p1969_p9 = pnand %p1968_p10, %p1962_p12 }
 0x92e   : > { %1972 = shalt.err (!%p1969_p9)
}
 0x92f   : > { %1525 = dma.vmem_to_hbm [thread:$0]  (%p2731_p1), %s2597_s7, 128, %s2595_s13, %s1107_s28  }
 0x930 PF: > { %s2733_s16 = sld [smem:[#allocation27_spill]]  ;;  %s2734_s27 = sld [smem:[#allocation34_spill]] }
 0x931   : > { %s2735_s19 = sld [smem:[#allocation30_spill]] }
 0x936   : > { %s1154_s12 = sand.u32 1, %s2733_s16   ;;  %p2736_p8 = scmp.ne.s32.totalorder %s2734_s27, 0 }
 0x937   : > { %p2737_p6 = scmp.ge.s32.totalorder %s2735_s19, 2  ;;  %s1155_s11 = scalar_lea.sflag [#allocation4], %s1154_s12 }
 0x939   : > { %p1559_p13 = pnand %p2737_p6, %p2736_p8 }
 0x93b   : > { %2018 = dma.done.wait (!%p1559_p13), %s1155_s11, 128  }
 0x93c   : > { %2020 = vsyncadd (!%p1559_p13), %s1155_s11, 4294967168  ;;  %s1164_s30 = scalar_lea.sflag [#allocation19], %s1154_s12 }
 0x93d   : > { %2022 = dma.done.wait (!%p1559_p13), %s1164_s30, 128  }
 0x93e   : > { %2024 = vsyncadd (!%p1559_p13), %s1164_s30, 4294967168  ;;  %s36_s18 = sadd.s32 1, %s2735_s19   ;;  %s2738_s24 = sld [smem:[#allocation28_spill]] }
 0x93f   : > { %p33_p4 = scmp.ge.s32.totalorder %s36_s18, 4   ;;  %s2739_s15 = sld [smem:[#allocation33_spill]] }
 0x940   : > { %s2740_s7 = sld [smem:[#allocation32_spill]]  ;;  %s2741_s13 = smov %s2031_s14 }
 0x941   : > { %s2743_s16 = smov %s2043_s17  ;;  %35 = sbr.rel (!%p33_p4) target bundleno = 20 (0x14), region = 167 }
 0x944   : > { %s2742_s14 = smov %s2738_s24 }
 0x946   : > { %s2744_s17 = smov %s2740_s7 }
 0x948   :  { %1169 = vsyncpa [#allocation3], 1 }
 0x949   :  { %1171 = vsyncpa [#allocation3 + $0x1], 1 }
 0x94a   :  { %1172 = vsyncpa [#allocation6], 1 }
 0x94b   :  { %1174 = vsyncpa [#allocation6 + $0x1], 1 }
 0x94c   :  { %1175 = vsyncpa [#allocation9], 1 }
 0x94d   :  { %1176 = vsyncpa [#allocation12], 1 }
 0x94e   :  { %1177 = vsyncpa [#allocation15], 1 }
 0x94f   :  { %1178 = vsyncpa [#allocation4], 1 }
 0x950   :  { %1180 = vsyncpa [#allocation4 + $0x1], 1 }
 0x951   :  { %1181 = vsyncpa [#allocation19], 1 }
 0x952   :  { %1183 = vsyncpa [#allocation19 + $0x1], 1 }

</bundles_post_ra>
